<compile_context>
chip_gen: v7x
topology: tpu7x:2x2x1
jax: 0.10.0
libtpu: 0.0.40
codegen_flags: <defaults>
</compile_context>

<pallas_src>
import functools

import jax
import jax.numpy as jnp
from jax import lax
from jax.experimental import pallas as pl
from jax.experimental.pallas import tpu as pltpu

LOG_SIG_MAX = 2.0
LOG_SIG_MIN = -20.0


# ----------------------------- Pallas kernel -------------------------------


def _policy_kernel(x_ref, w1_ref, b1_ref, w2_ref, b2_ref, wml_ref, bml_ref,
                   out_ref, *, action_size):
    """Actor MLP hot path: 3 bf16 MXU matmuls (+f32 acc), 2 ReLUs, 1 clamp."""
    x = x_ref[...]                                                  # (TM, F) bf16

    h = jnp.dot(x, w1_ref[...], preferred_element_type=jnp.float32) + b1_ref[...]
    h = jnp.maximum(h, 0.0).astype(jnp.bfloat16)                    # (TM, H)

    h = jnp.dot(h, w2_ref[...], preferred_element_type=jnp.float32) + b2_ref[...]
    h = jnp.maximum(h, 0.0).astype(jnp.bfloat16)                    # (TM, H)

    # fused mean||log_std head: one (H, 2A) matmul
    ml = jnp.dot(h, wml_ref[...], preferred_element_type=jnp.float32) + bml_ref[...]

    # clamp only the log_std half (columns [A, 2A)) without slicing the tile
    col = lax.broadcasted_iota(jnp.int32, ml.shape, 1)
    clamped = jnp.clip(ml, LOG_SIG_MIN, LOG_SIG_MAX)
    out_ref[...] = jnp.where(col < action_size, ml, clamped)


# ------------------------------ wrapper ------------------------------------


def _round_up(x, m):
    return (x + m - 1) // m * m


@jax.jit
def policy_forward(x, params):
    """Pallas implementation of Policy.forward(x) -> (mean, log_std)."""
    w1, b1, w2, b2, wml, bml = params
    lead = x.shape[:-1]
    feat = x.shape[-1]
    hidden = w1.shape[1]
    two_a = wml.shape[1]
    action_size = two_a // 2

    # flatten leading dims onto the sublane (row) axis
    m_rows = 1
    for d in lead:
        m_rows *= d
    x2d = x.reshape(m_rows, feat).astype(jnp.bfloat16)

    # bf16 operands for the MXU; biases stay f32 (added post-accumulation)
    w1b = w1.astype(jnp.bfloat16)
    w2b = w2.astype(jnp.bfloat16)
    wmlb = wml.astype(jnp.bfloat16)

    # row tiling: up to 512 rows per grid step; pad rows to a multiple of TM
    tm = 512 if m_rows >= 512 else _round_up(max(m_rows, 1), 8)
    m_pad = _round_up(m_rows, tm)
    if m_pad != m_rows:
        x2d = jnp.pad(x2d, ((0, m_pad - m_rows), (0, 0)))
    grid = (m_pad // tm,)

    pinned = lambda a: pl.BlockSpec(a.shape, lambda i: (0, 0))

    out = pl.pallas_call(
        functools.partial(_policy_kernel, action_size=action_size),
        out_shape=jax.ShapeDtypeStruct((m_pad, two_a), jnp.float32),
        grid=grid,
        in_specs=[
            pl.BlockSpec((tm, feat), lambda i: (i, 0)),   # x tile streams over rows
            pinned(w1b), pinned(b1),
            pinned(w2b), pinned(b2),
            pinned(wmlb), pinned(bml),
        ],
        out_specs=pl.BlockSpec((tm, two_a), lambda i: (i, 0)),
        compiler_params=pltpu.CompilerParams(
            dimension_semantics=("parallel",)),
    )(x2d, w1b, b1, w2b, b2, wmlb, bml)

    out = out[:m_rows]
    mean = out[:, :action_size].reshape(*lead, action_size)
    log_std = out[:, action_size:].reshape(*lead, action_size)
    return mean, log_std


# ------------------------- parameter construction --------------------------


def _xavier_uniform(key, fan_in, fan_out):
    """torch.nn.init.xavier_uniform_ (gain=1), stored as (in, out)."""
    limit = (6.0 / (fan_in + fan_out)) ** 0.5
    return jax.random.uniform(key, (fan_in, fan_out), jnp.float32, -limit, limit)


def init_policy_params(key, state_size, action_size, hidden_dim):
    k1, k2, k3, k4 = jax.random.split(key, 4)
    w1 = _xavier_uniform(k1, state_size, hidden_dim)
    w2 = _xavier_uniform(k2, hidden_dim, hidden_dim)
    w_mean = _xavier_uniform(k3, hidden_dim, action_size)
    w_log = _xavier_uniform(k4, hidden_dim, action_size)
    # fuse the mean / log_std heads (they consume the same hidden vector)
    wml = jnp.concatenate([w_mean, w_log], axis=1)          # (H, 2A)
    b1 = jnp.zeros((1, hidden_dim), jnp.float32)
    b2 = jnp.zeros((1, hidden_dim), jnp.float32)
    bml = jnp.zeros((1, 2 * action_size), jnp.float32)
    return (w1, b1, w2, b2, wml, bml)


def _reference_forward(x, params):
    """Pure-JAX reference (same bf16-operand / f32-accumulation recipe)."""
    w1, b1, w2, b2, wml, bml = params
    action_size = wml.shape[1] // 2
    xb = x.astype(jnp.bfloat16)
    h = jnp.dot(xb, w1.astype(jnp.bfloat16),
                preferred_element_type=jnp.float32) + b1
    h = jnp.maximum(h, 0.0).astype(jnp.bfloat16)
    h = jnp.dot(h, w2.astype(jnp.bfloat16),
                preferred_element_type=jnp.float32) + b2
    h = jnp.maximum(h, 0.0).astype(jnp.bfloat16)
    ml = jnp.dot(h, wml.astype(jnp.bfloat16),
                 preferred_element_type=jnp.float32) + bml
    mean = ml[..., :action_size]
    log_std = jnp.clip(ml[..., action_size:], LOG_SIG_MIN, LOG_SIG_MAX)
    return mean, log_std


# --------------------------------- main -------------------------------------


if __name__ == "__main__":
    # TODO(synk): Policy.sample() (Normal.rsample / tanh squashing / log_prob)
    # is host-side sampling logic and is not kernelized; only forward() is.
    state_size, action_size, hidden_dim = 12, 4, 32
    batch = 16

    key = jax.random.PRNGKey(0)
    k_x, k_params = jax.random.split(key)

    x = jax.random.normal(k_x, (batch, state_size), jnp.float32)
    params = init_policy_params(k_params, state_size, action_size, hidden_dim)

    mean, log_std = policy_forward(x, params)
    mean = jax.block_until_ready(mean)
    log_std = jax.block_until_ready(log_std)

    # sanity check against the pure-JAX reference
    r_mean, r_log = _reference_forward(x, params)
    assert mean.shape == (batch, action_size)
    assert log_std.shape == (batch, action_size)
    assert jnp.allclose(mean, r_mean, atol=1e-2, rtol=1e-2)
    assert jnp.allclose(log_std, r_log, atol=1e-2, rtol=1e-2)
    assert bool(jnp.all(log_std <= LOG_SIG_MAX)) and bool(jnp.all(log_std >= LOG_SIG_MIN))

    print("KERNEL_OK")
</pallas_src>

<mosaic_0001>
module attributes {stable_mosaic.version = 11 : i64} {
  func.func @_policy_kernel(%arg0: i32, %arg1: memref<16x12xbf16, #tpu.memory_space<vmem>>, %arg2: memref<12x32xbf16, #tpu.memory_space<vmem>>, %arg3: memref<1x32xf32, #tpu.memory_space<vmem>>, %arg4: memref<32x32xbf16, #tpu.memory_space<vmem>>, %arg5: memref<1x32xf32, #tpu.memory_space<vmem>>, %arg6: memref<32x8xbf16, #tpu.memory_space<vmem>>, %arg7: memref<1x8xf32, #tpu.memory_space<vmem>>, %arg8: memref<16x8xf32, #tpu.memory_space<vmem>>) attributes {dimension_semantics = [#tpu.dimension_semantics<parallel>], iteration_bounds = array<i64: 1>, scalar_prefetch = 0 : i64, scratch_operands = 0 : i64, tpu.core_type = #tpu.core_type<tc>, window_params = [{transform_indices = @transform_0, window_bounds = array<i64: 16, 12>}, {pipeline_mode = #tpu.pipeline_mode<synchronous>, transform_indices = @transform_1, window_bounds = array<i64: 12, 32>}, {pipeline_mode = #tpu.pipeline_mode<synchronous>, transform_indices = @transform_2, window_bounds = array<i64: 1, 32>}, {pipeline_mode = #tpu.pipeline_mode<synchronous>, transform_indices = @transform_3, window_bounds = array<i64: 32, 32>}, {pipeline_mode = #tpu.pipeline_mode<synchronous>, transform_indices = @transform_4, window_bounds = array<i64: 1, 32>}, {pipeline_mode = #tpu.pipeline_mode<synchronous>, transform_indices = @transform_5, window_bounds = array<i64: 32, 8>}, {pipeline_mode = #tpu.pipeline_mode<synchronous>, transform_indices = @transform_6, window_bounds = array<i64: 1, 8>}, {transform_indices = @transform_7, window_bounds = array<i64: 16, 8>}]} {
    %c0 = arith.constant 0 : index
    %c0_0 = arith.constant 0 : index
    %0 = vector.load %arg1[%c0, %c0_0] : memref<16x12xbf16, #tpu.memory_space<vmem>>, vector<16x12xbf16>
    %c0_1 = arith.constant 0 : index
    %c0_2 = arith.constant 0 : index
    %1 = vector.load %arg2[%c0_1, %c0_2] : memref<12x32xbf16, #tpu.memory_space<vmem>>, vector<12x32xbf16>
    %cst = arith.constant dense<0.000000e+00> : vector<16x32xf32>
    %2 = tpu.matmul %0, %1, %cst {dimension_numbers = #tpu.dot_dimension_numbers<[1], [0], [0], [1], [0, 0, 1, 1], [], []>} : vector<16x12xbf16>, vector<12x32xbf16>, vector<16x32xf32> -> vector<16x32xf32>
    %c0_3 = arith.constant 0 : index
    %c0_4 = arith.constant 0 : index
    %3 = vector.load %arg3[%c0_3, %c0_4] : memref<1x32xf32, #tpu.memory_space<vmem>>, vector<1x32xf32>
    %4 = vector.broadcast %3 : vector<1x32xf32> to vector<16x32xf32>
    %5 = arith.addf %2, %4 : vector<16x32xf32>
    %cst_5 = arith.constant 0.000000e+00 : f32
    %6 = vector.broadcast %cst_5 : f32 to vector<16x32xf32>
    %7 = arith.maximumf %5, %6 : vector<16x32xf32>
    %8 = arith.truncf %7 : vector<16x32xf32> to vector<16x32xbf16>
    %c0_6 = arith.constant 0 : index
    %c0_7 = arith.constant 0 : index
    %9 = vector.load %arg4[%c0_6, %c0_7] : memref<32x32xbf16, #tpu.memory_space<vmem>>, vector<32x32xbf16>
    %cst_8 = arith.constant dense<0.000000e+00> : vector<16x32xf32>
    %10 = tpu.matmul %8, %9, %cst_8 {dimension_numbers = #tpu.dot_dimension_numbers<[1], [0], [0], [1], [0, 0, 1, 1], [], []>} : vector<16x32xbf16>, vector<32x32xbf16>, vector<16x32xf32> -> vector<16x32xf32>
    %c0_9 = arith.constant 0 : index
    %c0_10 = arith.constant 0 : index
    %11 = vector.load %arg5[%c0_9, %c0_10] : memref<1x32xf32, #tpu.memory_space<vmem>>, vector<1x32xf32>
    %12 = vector.broadcast %11 : vector<1x32xf32> to vector<16x32xf32>
    %13 = arith.addf %10, %12 : vector<16x32xf32>
    %cst_11 = arith.constant 0.000000e+00 : f32
    %14 = vector.broadcast %cst_11 : f32 to vector<16x32xf32>
    %15 = arith.maximumf %13, %14 : vector<16x32xf32>
    %16 = arith.truncf %15 : vector<16x32xf32> to vector<16x32xbf16>
    %c0_12 = arith.constant 0 : index
    %c0_13 = arith.constant 0 : index
    %17 = vector.load %arg6[%c0_12, %c0_13] : memref<32x8xbf16, #tpu.memory_space<vmem>>, vector<32x8xbf16>
    %cst_14 = arith.constant dense<0.000000e+00> : vector<16x8xf32>
    %18 = tpu.matmul %16, %17, %cst_14 {dimension_numbers = #tpu.dot_dimension_numbers<[1], [0], [0], [1], [0, 0, 1, 1], [], []>} : vector<16x32xbf16>, vector<32x8xbf16>, vector<16x8xf32> -> vector<16x8xf32>
    %c0_15 = arith.constant 0 : index
    %c0_16 = arith.constant 0 : index
    %19 = vector.load %arg7[%c0_15, %c0_16] : memref<1x8xf32, #tpu.memory_space<vmem>>, vector<1x8xf32>
    %20 = vector.broadcast %19 : vector<1x8xf32> to vector<16x8xf32>
    %21 = arith.addf %18, %20 : vector<16x8xf32>
    %22 = tpu.iota {dimensions = array<i32: 1>} : vector<16x8xi32>
    %cst_17 = arith.constant -2.000000e+01 : f32
    %cst_18 = arith.constant 2.000000e+00 : f32
    %23 = vector.broadcast %cst_17 : f32 to vector<16x8xf32>
    %24 = arith.maximumf %23, %21 : vector<16x8xf32>
    %25 = vector.broadcast %cst_18 : f32 to vector<16x8xf32>
    %26 = arith.minimumf %25, %24 : vector<16x8xf32>
    %c4_i32 = arith.constant 4 : i32
    %27 = vector.broadcast %c4_i32 : i32 to vector<16x8xi32>
    %28 = arith.cmpi slt, %22, %27 : vector<16x8xi32>
    %29 = arith.select %28, %21, %26 : vector<16x8xi1>, vector<16x8xf32>
    %c0_19 = arith.constant 0 : index
    %c0_20 = arith.constant 0 : index
    %30 = vector.load %arg8[%c0_19, %c0_20] : memref<16x8xf32, #tpu.memory_space<vmem>>, vector<16x8xf32>
    tpu.vector_store %arg8[%c0_19, %c0_20], %29 {strides = array<i32>} : memref<16x8xf32, #tpu.memory_space<vmem>>, vector<16x8xf32>,
    return
  }
  func.func @transform_0(%arg0: i32) -> (i32, i32) {
    %c0_i32 = arith.constant 0 : i32
    %c0_i32_0 = arith.constant 0 : i32
    return %arg0, %c0_i32 : i32, i32
  }
  func.func @transform_1(%arg0: i32) -> (i32, i32) {
    %c0_i32 = arith.constant 0 : i32
    %c0_i32_0 = arith.constant 0 : i32
    %c0_i32_1 = arith.constant 0 : i32
    return %c0_i32, %c0_i32_0 : i32, i32
  }
  func.func @transform_2(%arg0: i32) -> (i32, i32) {
    %c0_i32 = arith.constant 0 : i32
    %c0_i32_0 = arith.constant 0 : i32
    %c0_i32_1 = arith.constant 0 : i32
    return %c0_i32, %c0_i32_0 : i32, i32
  }
  func.func @transform_3(%arg0: i32) -> (i32, i32) {
    %c0_i32 = arith.constant 0 : i32
    %c0_i32_0 = arith.constant 0 : i32
    %c0_i32_1 = arith.constant 0 : i32
    return %c0_i32, %c0_i32_0 : i32, i32
  }
  func.func @transform_4(%arg0: i32) -> (i32, i32) {
    %c0_i32 = arith.constant 0 : i32
    %c0_i32_0 = arith.constant 0 : i32
    %c0_i32_1 = arith.constant 0 : i32
    return %c0_i32, %c0_i32_0 : i32, i32
  }
  func.func @transform_5(%arg0: i32) -> (i32, i32) {
    %c0_i32 = arith.constant 0 : i32
    %c0_i32_0 = arith.constant 0 : i32
    %c0_i32_1 = arith.constant 0 : i32
    return %c0_i32, %c0_i32_0 : i32, i32
  }
  func.func @transform_6(%arg0: i32) -> (i32, i32) {
    %c0_i32 = arith.constant 0 : i32
    %c0_i32_0 = arith.constant 0 : i32
    %c0_i32_1 = arith.constant 0 : i32
    return %c0_i32, %c0_i32_0 : i32, i32
  }
  func.func @transform_7(%arg0: i32) -> (i32, i32) {
    %c0_i32 = arith.constant 0 : i32
    %c0_i32_0 = arith.constant 0 : i32
    return %arg0, %c0_i32 : i32, i32
  }
}

</mosaic_0001>

<bundles_post_ra>
// kernel: policy_forward.1
= control target key start
LH: loop header
LB: loop body
LE: loop exit
PB: predicated region body
PF: predicated region fallthrough
CT: control target
= control target key end

     0   :  { %vm52_vm0 = vcmask 1045504   ;;  %v304_v0 = vmov 0.0   ;;  %vm305_vm1 = vmmov 0   ;;  %vm48_vm2 = vcmask 97280   ;;  %s381_s1 = inlined_call_operand.vmem [shape: bf16[12,32], index: 1, kind: input, shape index: {}]   ;;  %s382_s0 = inlined_call_operand.vmem [shape: bf16[16,12], index: 0, kind: input, shape index: {}]   ;;  %s383_s3 = inlined_call_operand.vmem [shape: bf16[32,32], index: 3, kind: input, shape index: {}]   ;;  %s384_s2 = inlined_call_operand.vmem [shape: f32[1,32], index: 2, kind: input, shape index: {}]   ;;  %s385_s5 = inlined_call_operand.vmem [shape: bf16[32,8], index: 5, kind: input, shape index: {}]   ;;  %s386_s4 = inlined_call_operand.vmem [shape: f32[1,32], index: 4, kind: input, shape index: {}]   ;;  %s387_s6 = inlined_call_operand.vmem [shape: f32[1,8], index: 6, kind: input, shape index: {}]   ;;  %s388_s7 = inlined_call_operand.vmem [shape: f32[16,8], index: 7, kind: output, shape index: {}]  }
   0x1   :  { %274 = vmatprep.subr.bf16.mxu0 %v304_v0  ;;  %v298_v1 = vld [vmem:[%s381_s1] sm:$0x3f]   ;;  %276 = vmatprep.mubr.msk.bf16.mxu0 %vm305_vm1, %v304_v0  ;;  %v301_v5 = vld [vmem:[%s383_s3 + $0x8] sm:$0xff]   ;;  %vm123_vm3 = vcmask 261120   ;;  %v238_v28 = vlaneseq  ;;  %vm247_vm5 = vcmask 64512  }
   0x2   :  { %280 = vmatprep.subr.bf16.mxu1 %v304_v0  ;;  %284 = vmatprep.mubr.msk.bf16.mxu1 %vm305_vm1, %v304_v0  ;;  %v54_v2 = vsel %vm52_vm0, %v298_v1, 0  ;;  %v299_v3 = vld [vmem:[%s382_s0] sm:$0xff]   ;;  %v303_v17 = vld [vmem:[%s385_s5 + $0x8] sm:$0xff]  }
   0x3   :  { %275 = vmatpush3.bf16.msra.mxu0 %v54_v2  ;;  %v300_v4 = vld [vmem:[%s383_s3] sm:$0xff]   ;;  %v239_v31 = vand.u32 127, %v238_v28 }
   0x4   :  { %288 = vmatprep.subr.bf16.mxu0 %v304_v0  ;;  %281 = vmatpush3.bf16.msra.mxu1 %v300_v4  ;;  %v254_v6 = vld [vmem:[%s384_s2] ss:$0 sm:$0xff] }
   0x5   :  { %282 = vmatprep.subr.bf16.mxu1 %v304_v0  ;;  %v302_v16 = vld [vmem:[%s385_s5] sm:$0xff]   ;;  %vm244_vm4 = vcmp.lt.s32.totalorder %v239_v31, 4 }
   0x6   :  { %277 = vmatmul.mubr.msk.bf16.vlgmr.msra.gmra.mrb[0].mxu0 %vm48_vm2, %v299_v3  ;;  %v258_v18 = vld [vmem:[%s386_s4] ss:$0 sm:$0xff] }
   0x7   :  { %292 = vmatprep.mubr.msk.bf16.mxu0 %vm305_vm1, %v304_v0  ;;  %289 = vmatpush3.bf16.msra.mxu0 %v302_v16  ;;  %v262_v29 = vld [vmem:[%s387_s6] ss:$0 sm:$0xff] }
   0x8   :  { %283 = vmatpush3.bf16.msra.mxu1 %v301_v5  ;;  %290 = vmatprep.subr.bf16.mxu0 %v304_v0 }
   0xb   :  { %291 = vmatpush3.bf16.msra.mxu0 %v303_v17 }
  0xd9   :  { %v90_v7 = vpop.f32.mrb[0].mxu0 }
  0xda   :  { %v91_v8 = vadd.f32 %v254_v6, %v90_v7  ;;  %v278_v9 = vpop.f32.mrb[1].mxu0 }
  0xdb   :  { %v93_v10 = vpop.f32.mrb[2].mxu0 }
  0xdc   :  { %v94_v11 = vadd.f32 %v254_v6, %v93_v10  ;;  %v279_v12 = vpop.f32.mrb[3].mxu0  ;;  %v97_v13 = vmax.f32 %v91_v8, 0.0 }
  0xde   :  { %v98_v14 = vmax.f32 %v94_v11, 0.0 }
  0xe0   :  { %v99_v15 = vpack.c.bf16 %v98_v14, %v97_v13 }
  0xe2   :  { %285 = vmatmul.mubr.msk.bf16.vlgmr.msra.gmra.mrb[0].mxu1 %vm123_vm3, %v99_v15 }
 0x1b5   :  { %v161_v19 = vpop.f32.mrb[0].mxu1 }
 0x1b6   :  { %v162_v20 = vadd.f32 %v258_v18, %v161_v19  ;;  %v286_v21 = vpop.f32.mrb[1].mxu1 }
 0x1b7   :  { %v164_v22 = vpop.f32.mrb[2].mxu1 }
 0x1b8   :  { %v165_v23 = vadd.f32 %v258_v18, %v164_v22  ;;  %v287_v24 = vpop.f32.mrb[3].mxu1  ;;  %v168_v25 = vmax.f32 %v162_v20, 0.0 }
 0x1ba   :  { %v169_v26 = vmax.f32 %v165_v23, 0.0 }
 0x1bc   :  { %v170_v27 = vpack.c.bf16 %v169_v26, %v168_v25 }
 0x1be   :  { %293 = vmatmul.mubr.msk.bf16.vlgmr.msra.gmra.mrb[4].mxu0 %vm123_vm3, %v170_v27 }
 0x291   :  { %v231_v30 = vpop.f32.mrb[4].mxu0 }
 0x292   :  { %v232_v32 = vadd.f32 %v262_v29, %v231_v30  ;;  %v294_v33 = vpop.f32.mrb[5].mxu0 }
 0x293   :  { %v234_v34 = vpop.f32.mrb[6].mxu0 }
 0x294   :  { %v240_v35 = vmax.f32 %v232_v32, -20.0  ;;  %v235_v36 = vadd.f32 %v262_v29, %v234_v34  ;;  %v295_v37 = vpop.f32.mrb[7].mxu0 }
 0x296   :  { %v242_v38 = vmin.f32 %v240_v35, 2.0  ;;  %v241_v39 = vmax.f32 %v235_v36, -20.0 }
 0x298   :  { %v245_v40 = vsel %vm244_vm4, %v232_v32, %v242_v38  ;;  %v243_v41 = vmin.f32 %v241_v39, 2.0 }
 0x299   :  { %248 = vst.msk [vmem:[%s388_s7] sm:$0xff] %vm247_vm5, %v245_v40 }
 0x29a   :  { %v246_v42 = vsel %vm244_vm4, %v235_v36, %v243_v41 }
 0x29b   :  { %249 = vst.msk [vmem:[%s388_s7 + $0x8] sm:$0xff] %vm247_vm5, %v246_v42 }

</bundles_post_ra>
